<compile_context>
chip_gen: v7x
topology: tpu7x:2x2x1
jax: 0.10.0
libtpu: 0.0.40
codegen_flags: <defaults>
</compile_context>

<pallas_src>
import functools

import jax
import jax.numpy as jnp
from jax.experimental import pallas as pl
from jax.experimental.pallas import tpu as pltpu


def _pagfm_kernel(p_ref, x_ref, y_ref, o_ref, *, C):
    """x_ref/y_ref/o_ref: (C, TS) blocks — channels in sublanes, spatial in lanes.

    p_ref: (C, C+3) f32 VMEM tile, columns = [A (CxC) | u | v | c (replicated)].
    """
    x = x_ref[...].astype(jnp.float32)              # (C, TS)
    y = y_ref[...].astype(jnp.float32)              # (C, TS)
    P = p_ref[...]                                  # (C, C+3) f32

    u = P[:, C:C + 1]                               # (C, 1)
    v = P[:, C + 1:C + 2]                           # (C, 1)
    c = P[0:1, C + 2:C + 3]                         # (1, 1)

    # Ay[i, p] = sum_j A[i, j] * y[j, p] — full-width (C, TS) FMAs via
    # outer-product broadcasts (A column over lanes, y row over sublanes),
    # so the VPU runs at C/8 vreg utilization instead of 1/8.
    Ay = P[:, 0:1] * y[0:1, :]
    for j in range(1, C):
        Ay = Ay + P[:, j:j + 1] * y[j:j + 1, :]

    t = x * (Ay + u) + v * y                        # (C, TS)
    # Channel reduction lands on the XLU (separate VLIW slot — ~free).
    logit = jnp.sum(t, axis=0, keepdims=True) + c   # (1, TS)
    # exp lowers to the EUP slot; keep the exact sigmoid (one transcendental
    # per pixel) for bit-tight agreement with the reference.  A
    # pl.reciprocal(..., approx=True) variant is possible if ever VALU-bound.
    sim = jax.nn.sigmoid(logit)                     # (1, TS)
    o_ref[...] = (x + sim * (y - x)).astype(o_ref.dtype)


def _min_sublanes(itemsize):
    # f32 native tile is (8,128); bf16 (16,128); int8 (32,128).
    return 8 * max(1, 4 // max(1, itemsize))


def _pick_tile_s(S, C, itemsize):
    """Largest lane tile: ~4 MiB *physical* per (C, tile_s) input block on
    v6e/v7x (~2 MiB on v5e), accounting for sublane padding of small C."""
    padded_c = ((C + _min_sublanes(itemsize) - 1)
                // _min_sublanes(itemsize)) * _min_sublanes(itemsize)
    kind = ""
    try:
        kind = jax.devices()[0].device_kind.lower()
    except Exception:
        pass
    small_vmem = ("v5 lite" in kind) or ("v5e" in kind) or ("v5litepod" in kind)
    phys_target = (2 << 20) if small_vmem else (4 << 20)
    t = max(128, phys_target // (padded_c * itemsize))
    if S <= t:
        return S                                # whole image in one lane block
    return (t // 128) * 128                     # lane dim multiple of 128


@functools.partial(jax.jit, static_argnames=("tile_s",))
def pagfm_forward(x_nchw, y_nchw, wx, sx, bx, wy, sy, by, *, tile_s=None):
    """x_nchw, y_nchw: (N, C, H, W). wx/wy: (C, M). sx/bx/sy/by: (M,) folded BN."""
    N, C, H, W = x_nchw.shape
    assert y_nchw.shape == x_nchw.shape, (
        "kernel requires y at x's spatial size (the module's blend needs it)")
    S = H * W
    itemsize = jnp.dtype(x_nchw.dtype).itemsize
    if tile_s is None:
        tile_s = _pick_tile_s(S, C, itemsize)

    # ---- fold f_x / f_y (1x1 conv + inference BN) into a bilinear form ----
    #   sim_logit(p) = x_p^T A y_p + u.x_p + v.y_p + c
    sxy = sx * sy
    A = (wx * sxy[None, :]) @ wy.T              # (C, C)
    u = wx @ (sx * by)                          # (C,)
    v = wy @ (sy * bx)                          # (C,)
    c = jnp.sum(bx * by)                        # ()
    params = jnp.concatenate(
        [A, u[:, None], v[:, None], jnp.full((C, 1), c, A.dtype)],
        axis=1).astype(jnp.float32)             # (C, C+3) — tiny VMEM tile

    # ---- zero-copy NCHW -> (N, C, H*W); spatial is the lane axis ----
    x3 = x_nchw.reshape(N, C, S)
    y3 = y_nchw.reshape(N, C, S)

    # Non-divisible final block is fine: compute is elementwise per lane and
    # the final store is masked, so no jnp.pad / output slice HBM round trip.
    grid = (N, pl.cdiv(S, tile_s))

    tile_spec = pl.BlockSpec((None, C, tile_s), lambda n, j: (n, 0, j))
    params_spec = pl.BlockSpec((C, C + 3), lambda n, j: (0, 0))

    # VMEM budget: 3 streams x 2 buffers x physically-padded block + headroom.
    padded_c = ((C + _min_sublanes(itemsize) - 1)
                // _min_sublanes(itemsize)) * _min_sublanes(itemsize)
    block_phys = padded_c * tile_s * itemsize
    vmem_bytes = int(max(16 << 20, min(6 * block_phys + (4 << 20), 48 << 20)))

    out3 = pl.pallas_call(
        functools.partial(_pagfm_kernel, C=C),
        out_shape=jax.ShapeDtypeStruct((N, C, S), x_nchw.dtype),
        grid_spec=pltpu.PrefetchScalarGridSpec(
            num_scalar_prefetch=0,
            grid=grid,
            in_specs=[params_spec, tile_spec, tile_spec],
            out_specs=tile_spec,
        ),
        compiler_params=pltpu.CompilerParams(
            dimension_semantics=("parallel", "parallel"),
            vmem_limit_bytes=vmem_bytes),
    )(params, x3, y3)

    return out3.reshape(N, C, H, W)


def _fold_bn(gamma, beta, mean, var, eps=1e-5):
    scale = gamma / jnp.sqrt(var + eps)
    bias = beta - mean * scale
    return scale, bias


def _reference(x, y, wx, sx, bx, wy, sy, by):
    # Pure-JAX reference of the module's math (NCHW, inference BN).
    def conv_bn(z, w, s, b):
        zq = jnp.einsum("nchw,cm->nmhw", z, w)
        return zq * s[None, :, None, None] + b[None, :, None, None]
    x_k = conv_bn(x, wx, sx, bx)
    y_q = conv_bn(y, wy, sy, by)
    sim = jax.nn.sigmoid(jnp.sum(x_k * y_q, axis=1, keepdims=True))
    return (1.0 - sim) * x + sim * y


if __name__ == "__main__":
    key = jax.random.PRNGKey(0)
    N, C, H, W = 2, 4, 16, 16       # in_channels = 4
    M = 16                          # mid_channels = 16

    ks = jax.random.split(key, 12)
    x = jax.random.normal(ks[0], (N, C, H, W), jnp.float32)
    y = jax.random.normal(ks[1], (N, C, H, W), jnp.float32)

    # f_x / f_y conv weights (torch (M, C, 1, 1)) -> matmul weights (C, M)
    wx = jax.random.normal(ks[2], (C, M), jnp.float32) * 0.2
    wy = jax.random.normal(ks[3], (C, M), jnp.float32) * 0.2

    # BatchNorm (inference) params, deterministic but non-trivial
    gx = 1.0 + 0.1 * jax.random.normal(ks[4], (M,), jnp.float32)
    bx_ = 0.1 * jax.random.normal(ks[5], (M,), jnp.float32)
    mx = 0.05 * jax.random.normal(ks[6], (M,), jnp.float32)
    vx = 1.0 + 0.1 * jax.random.uniform(ks[7], (M,), jnp.float32)
    gy = 1.0 + 0.1 * jax.random.normal(ks[8], (M,), jnp.float32)
    by_ = 0.1 * jax.random.normal(ks[9], (M,), jnp.float32)
    my = 0.05 * jax.random.normal(ks[10], (M,), jnp.float32)
    vy = 1.0 + 0.1 * jax.random.uniform(ks[11], (M,), jnp.float32)

    sx, bxf = _fold_bn(gx, bx_, mx, vx)
    sy, byf = _fold_bn(gy, by_, my, vy)

    out = pagfm_forward(x, y, wx, sx, bxf, wy, sy, byf)
    out = jax.block_until_ready(out)

    ref = _reference(x, y, wx, sx, bxf, wy, sy, byf)
    assert out.shape == (N, C, H, W)
    assert jnp.allclose(out, ref, atol=1e-4, rtol=1e-4), "mismatch vs reference"
    print("KERNEL_OK")
</pallas_src>

<mosaic_0001>
module attributes {stable_mosaic.version = 11 : i64} {
  func.func @_pagfm_kernel(%arg0: i32, %arg1: i32, %arg2: memref<4x7xf32, #tpu.memory_space<vmem>>, %arg3: memref<1x4x256xf32, #tpu.memory_space<vmem>>, %arg4: memref<1x4x256xf32, #tpu.memory_space<vmem>>, %arg5: memref<1x4x256xf32, #tpu.memory_space<vmem>>) attributes {dimension_semantics = [#tpu.dimension_semantics<parallel>, #tpu.dimension_semantics<parallel>], iteration_bounds = array<i64: 2, 1>, scalar_prefetch = 0 : i64, scratch_operands = 0 : i64, tpu.core_type = #tpu.core_type<tc>, window_params = [{pipeline_mode = #tpu.pipeline_mode<synchronous>, transform_indices = @transform_0, window_bounds = array<i64: 4, 7>}, {transform_indices = @transform_1, window_bounds = array<i64: 1, 4, 256>}, {transform_indices = @transform_2, window_bounds = array<i64: 1, 4, 256>}, {transform_indices = @transform_3, window_bounds = array<i64: 1, 4, 256>}]} {
    %c0 = arith.constant 0 : index
    %c0_0 = arith.constant 0 : index
    %c0_1 = arith.constant 0 : index
    %0 = vector.load %arg3[%c0, %c0_0, %c0_1] : memref<1x4x256xf32, #tpu.memory_space<vmem>>, vector<1x4x256xf32>
    %1 = vector.shape_cast %0 : vector<1x4x256xf32> to vector<4x256xf32>
    %c0_2 = arith.constant 0 : index
    %c0_3 = arith.constant 0 : index
    %c0_4 = arith.constant 0 : index
    %2 = vector.load %arg4[%c0_2, %c0_3, %c0_4] : memref<1x4x256xf32, #tpu.memory_space<vmem>>, vector<1x4x256xf32>
    %3 = vector.shape_cast %2 : vector<1x4x256xf32> to vector<4x256xf32>
    %c0_5 = arith.constant 0 : index
    %c0_6 = arith.constant 0 : index
    %4 = vector.load %arg2[%c0_5, %c0_6] : memref<4x7xf32, #tpu.memory_space<vmem>>, vector<4x7xf32>
    %5 = vector.extract_strided_slice %4 {offsets = [0, 4], sizes = [4, 1], strides = [1, 1]} : vector<4x7xf32> to vector<4x1xf32>
    %6 = vector.extract_strided_slice %4 {offsets = [0, 5], sizes = [4, 1], strides = [1, 1]} : vector<4x7xf32> to vector<4x1xf32>
    %7 = vector.extract_strided_slice %4 {offsets = [0, 6], sizes = [1, 1], strides = [1, 1]} : vector<4x7xf32> to vector<1x1xf32>
    %8 = vector.extract_strided_slice %4 {offsets = [0, 0], sizes = [4, 1], strides = [1, 1]} : vector<4x7xf32> to vector<4x1xf32>
    %9 = vector.extract_strided_slice %3 {offsets = [0, 0], sizes = [1, 256], strides = [1, 1]} : vector<4x256xf32> to vector<1x256xf32>
    %10 = vector.broadcast %8 : vector<4x1xf32> to vector<4x256xf32>
    %11 = vector.broadcast %9 : vector<1x256xf32> to vector<4x256xf32>
    %12 = arith.mulf %10, %11 : vector<4x256xf32>
    %13 = vector.extract_strided_slice %4 {offsets = [0, 1], sizes = [4, 1], strides = [1, 1]} : vector<4x7xf32> to vector<4x1xf32>
    %14 = vector.extract_strided_slice %3 {offsets = [1, 0], sizes = [1, 256], strides = [1, 1]} : vector<4x256xf32> to vector<1x256xf32>
    %15 = vector.broadcast %13 : vector<4x1xf32> to vector<4x256xf32>
    %16 = vector.broadcast %14 : vector<1x256xf32> to vector<4x256xf32>
    %17 = arith.mulf %15, %16 : vector<4x256xf32>
    %18 = arith.addf %12, %17 : vector<4x256xf32>
    %19 = vector.extract_strided_slice %4 {offsets = [0, 2], sizes = [4, 1], strides = [1, 1]} : vector<4x7xf32> to vector<4x1xf32>
    %20 = vector.extract_strided_slice %3 {offsets = [2, 0], sizes = [1, 256], strides = [1, 1]} : vector<4x256xf32> to vector<1x256xf32>
    %21 = vector.broadcast %19 : vector<4x1xf32> to vector<4x256xf32>
    %22 = vector.broadcast %20 : vector<1x256xf32> to vector<4x256xf32>
    %23 = arith.mulf %21, %22 : vector<4x256xf32>
    %24 = arith.addf %18, %23 : vector<4x256xf32>
    %25 = vector.extract_strided_slice %4 {offsets = [0, 3], sizes = [4, 1], strides = [1, 1]} : vector<4x7xf32> to vector<4x1xf32>
    %26 = vector.extract_strided_slice %3 {offsets = [3, 0], sizes = [1, 256], strides = [1, 1]} : vector<4x256xf32> to vector<1x256xf32>
    %27 = vector.broadcast %25 : vector<4x1xf32> to vector<4x256xf32>
    %28 = vector.broadcast %26 : vector<1x256xf32> to vector<4x256xf32>
    %29 = arith.mulf %27, %28 : vector<4x256xf32>
    %30 = arith.addf %24, %29 : vector<4x256xf32>
    %31 = vector.broadcast %5 : vector<4x1xf32> to vector<4x256xf32>
    %32 = arith.addf %30, %31 : vector<4x256xf32>
    %33 = arith.mulf %1, %32 : vector<4x256xf32>
    %34 = vector.broadcast %6 : vector<4x1xf32> to vector<4x256xf32>
    %35 = arith.mulf %34, %3 : vector<4x256xf32>
    %36 = arith.addf %33, %35 : vector<4x256xf32>
    %cst = arith.constant dense<0.000000e+00> : vector<256xf32>
    %37 = vector.multi_reduction <add>, %36, %cst [0] : vector<4x256xf32> to vector<256xf32>
    %38 = vector.shape_cast %37 : vector<256xf32> to vector<1x256xf32>
    %39 = vector.broadcast %7 : vector<1x1xf32> to vector<1x256xf32>
    %40 = arith.addf %38, %39 : vector<1x256xf32>
    %41 = arith.negf %40 : vector<1x256xf32>
    %42 = math.exp %41 : vector<1x256xf32>
    %cst_7 = arith.constant 1.000000e+00 : f32
    %43 = vector.broadcast %cst_7 : f32 to vector<1x256xf32>
    %44 = arith.addf %43, %42 : vector<1x256xf32>
    %45 = arith.divf %43, %44 : vector<1x256xf32>
    %46 = arith.subf %3, %1 : vector<4x256xf32>
    %47 = vector.broadcast %45 : vector<1x256xf32> to vector<4x256xf32>
    %48 = arith.mulf %47, %46 : vector<4x256xf32>
    %49 = arith.addf %1, %48 : vector<4x256xf32>
    %c0_8 = arith.constant 0 : index
    %c0_9 = arith.constant 0 : index
    %c0_10 = arith.constant 0 : index
    %50 = vector.load %arg5[%c0_8, %c0_9, %c0_10] : memref<1x4x256xf32, #tpu.memory_space<vmem>>, vector<1x4x256xf32>
    %51 = vector.shape_cast %50 : vector<1x4x256xf32> to vector<4x256xf32>
    %52 = vector.shape_cast %49 : vector<4x256xf32> to vector<1x4x256xf32>
    tpu.vector_store %arg5[%c0_8, %c0_9, %c0_10], %52 {strides = array<i32>} : memref<1x4x256xf32, #tpu.memory_space<vmem>>, vector<1x4x256xf32>,
    return
  }
  func.func @transform_0(%arg0: i32, %arg1: i32) -> (i32, i32) {
    %c0_i32 = arith.constant 0 : i32
    %c0_i32_0 = arith.constant 0 : i32
    %c0_i32_1 = arith.constant 0 : i32
    return %c0_i32, %c0_i32_0 : i32, i32
  }
  func.func @transform_1(%arg0: i32, %arg1: i32) -> (i32, i32, i32) {
    %c0_i32 = arith.constant 0 : i32
    %c0_i32_0 = arith.constant 0 : i32
    return %arg0, %c0_i32, %arg1 : i32, i32, i32
  }
  func.func @transform_2(%arg0: i32, %arg1: i32) -> (i32, i32, i32) {
    %c0_i32 = arith.constant 0 : i32
    %c0_i32_0 = arith.constant 0 : i32
    return %arg0, %c0_i32, %arg1 : i32, i32, i32
  }
  func.func @transform_3(%arg0: i32, %arg1: i32) -> (i32, i32, i32) {
    %c0_i32 = arith.constant 0 : i32
    %c0_i32_0 = arith.constant 0 : i32
    return %arg0, %c0_i32, %arg1 : i32, i32, i32
  }
}

</mosaic_0001>

<bundles_post_ra>
// kernel: pagfm_forward.1
= control target key start
LH: loop header
LB: loop body
LE: loop exit
PB: predicated region body
PF: predicated region fallthrough
CT: control target
= control target key end

     0   :  { %s655_s12 = smov 0   ;;  %s657_s13 = smov 0   ;;  %s724_s0 = inlined_call_operand.vmem [shape: f32[4,7], index: 0, kind: input, shape index: {}]   ;;  %s725_s1 = inlined_call_operand.vmem [shape: f32[2,4,256], index: 1, kind: input, shape index: {}]   ;;  %s726_s2 = inlined_call_operand.vmem [shape: f32[2,4,256], index: 2, kind: input, shape index: {}]   ;;  %s727_s3 = inlined_call_operand.vmem [shape: f32[2,4,256], index: 3, kind: output, shape index: {}]  }
   0x1   :  { %s659_s14 = smov 0  }
   0x2 LB: > { %s25_s15 = sadd.s32 1, %s622_s13  ;;  %p542_p0 = scmp.ge.s32.totalorder %s626_s14, 1  ;;  %s626_s14 = sphi %s659_s14, %s13_s14   ;;  %s622_s13 = sphi %s657_s13, %s729_s13   ;;  %s618_s12 = sphi %s655_s12, %s728_s12  }
   0x3   : > { %p27_p1 = scmp.ge.s32.totalorder %s25_s15, 2  ;;  %p175_p2 = scmp.lt.s32.totalorder %s626_s14, 3 }
   0x5   : > { %s731_s15 = smov (%p27_p1, %s25_s15), 0  ;;  %p176_p3 = pnand %p542_p0, %p175_p2 }
   0x6   : > { %v248_v0 = vld [vmem:[%s724_s0] sm:$0xf] (!%p176_p3)  ;;  %v628_v1 = vmov (!%p176_p3), 0   ;;  %v629_v2 = vmov (!%p176_p3), 2   ;;  %v630_v3 = vmov (!%p176_p3), 1   ;;  %v631_v4 = vmov (!%p176_p3), 3  }
   0x7   : > { %179 = sbr.rel (%p176_p3) target bundleno = 209 (0xd1), region = 32  ;;  %587 = vset.pattern.permute.xlu0 (!%p176_p3), %v628_v1  ;;  %589 = vset.pattern.permute.xlu1 (!%p176_p3), %v629_v2  ;;  %v632_v5 = vmov (!%p176_p3), 4   ;;  %v633_v6 = vmov (!%p176_p3), 5   ;;  %v634_v7 = vmov (!%p176_p3), 6   ;;  %p217_p4 = scmp.lt.s32.totalorder (!%p176_p3), %s618_s12, 1  ;;  %v255_v8 = vlaneseq (!%p176_p3) }
   0x8   : > { %251 = vperm.xlu0 (!%p176_p3), %587, %v248_v0   ;;  %302 = vperm.xlu1 (!%p176_p3), %589, %v248_v0   ;;  %vm380_vm0 = vcmask (!%p176_p3), 1043456  }
   0x9   : > { %v256_v9 = vshrl.u32 (!%p176_p3), %v255_v8, 7 }
   0xb   : > { %v686_v10 = vsub.s32 (!%p176_p3), 0, %v256_v9  ;;  %v261_v11 = vsub.s32 (!%p176_p3), 4, %v256_v9  ;;  %v281_v12 = vsub.s32 (!%p176_p3), 1, %v256_v9  ;;  %v285_v13 = vsub.s32 (!%p176_p3), 5, %v256_v9 }
   0xc   : > { %588 = vset.pattern.permute.xlu0 (!%p176_p3), %v630_v3  ;;  %590 = vset.pattern.permute.xlu1 (!%p176_p3), %v631_v4  ;;  %v307_v15 = vsub.s32 (!%p176_p3), 2, %v256_v9  ;;  %v311_v16 = vsub.s32 (!%p176_p3), 6, %v256_v9  ;;  %v333_v17 = vsub.s32 (!%p176_p3), 3, %v256_v9  ;;  %v337_v18 = vsub.s32 (!%p176_p3), 7, %v256_v9 }
   0xd   : > { %276 = vperm.xlu0 (!%p176_p3), %588, %v248_v0   ;;  %328 = vperm.xlu1 (!%p176_p3), %590, %v248_v0  }
   0xe   : > { %s733_s12 = smov (!%p217_p4, %s618_s12), 1 }
   0xf   : > { %s680_s18 = sshll.u32 %s733_s12, 3 }
  0x10   : > { %s234_s21 = scalar_lea.vmem %s726_s2, %s680_s18  ;;  %s224_s24 = scalar_lea.vmem %s725_s1, %s680_s18 }
  0x11   : > { %591 = vset.pattern.permute.xlu1 %v632_v5  ;;  %592 = vset.pattern.permute.xlu0 %v633_v6  ;;  %v688_v14 = vld [vmem:[%s234_s21] sm:$0xff]  ;;  %s244_s27 = scalar_lea.vmem %s727_s3, %s680_s18 }
  0x12   : > { %354 = vperm.xlu1 %591, %v248_v0   ;;  %365 = vperm.xlu0 %592, %v248_v0   ;;  %v258_v19 = vrot.slane %v688_v14, %v686_v10  ;;  %v262_v20 = vrot.slane %v688_v14, %v261_v11  ;;  %v282_v21 = vrot.slane %v688_v14, %v281_v12  ;;  %v246_v60 = vld [vmem:[%s224_s24] sm:$0xff] }
  0x13   : > { %v286_v22 = vrot.slane %v688_v14, %v285_v13  ;;  %v308_v23 = vrot.slane %v688_v14, %v307_v15  ;;  %v312_v24 = vrot.slane %v688_v14, %v311_v16  ;;  %v334_v27 = vrot.slane %v688_v14, %v333_v17 }
  0x14   : > { %v338_v28 = vrot.slane %v688_v14, %v337_v18  ;;  %v268_v29 = vrot.slane %v258_v19, %v686_v10  ;;  %v272_v30 = vrot.slane %v262_v20, %v686_v10  ;;  %v292_v31 = vrot.slane %v282_v21, %v281_v12 }
  0x15   : > { %v296_v32 = vrot.slane %v286_v22, %v281_v12  ;;  %v318_v33 = vrot.slane %v308_v23, %v307_v15  ;;  %v322_v34 = vrot.slane %v312_v24, %v307_v15  ;;  %v344_v35 = vrot.slane %v334_v27, %v333_v17 }
  0x16   : > { %593 = vset.pattern.permute.xlu1 %v634_v7  ;;  %594 = vset.pattern.permute.xlu0 %v634_v7  ;;  %v348_v36 = vrot.slane %v338_v28, %v333_v17  ;;  %v368_v45 = vcombine.high %v688_v14, %v688_v14  ;;  %v413_v27 = vsub.f32 %v688_v14, %v246_v60 }
  0x17   : > { %396 = vperm.xlu1 %593, %v248_v0  }
  0x87   : > { %v252_v25 = vpop.permute.xlu0 %251  ;;  %v303_v26 = vpop.permute.xlu1 %302 }
  0x88   : > { %v273_v39 = vmul.f32 %v268_v29, %v252_v25  ;;  %v274_v40 = vmul.f32 %v272_v30, %v252_v25  ;;  %v323_v43 = vmul.f32 %v318_v33, %v303_v26  ;;  %v324_v44 = vmul.f32 %v322_v34, %v303_v26 }
  0x89   : > { %v423_v29 = vcombine.high %v413_v27, %v413_v27 }
  0x8c   : > { %v277_v37 = vpop.permute.xlu0 %276  ;;  %v329_v38 = vpop.permute.xlu1 %328 }
  0x8d   : > { %v297_v41 = vmul.f32 %v292_v31, %v277_v37  ;;  %v298_v42 = vmul.f32 %v296_v32, %v277_v37  ;;  %v349_v48 = vmul.f32 %v344_v35, %v329_v38  ;;  %v350_v49 = vmul.f32 %v348_v36, %v329_v38 }
  0x8f   : > { %v299_v46 = vadd.f32 %v297_v41, %v273_v39  ;;  %v300_v47 = vadd.f32 %v298_v42, %v274_v40 }
  0x91   : > { %v325_v50 = vadd.f32 %v323_v43, %v299_v46  ;;  %v326_v51 = vadd.f32 %v324_v44, %v300_v47  ;;  %v366_v52 = vpop.permute.xlu0 %365  ;;  %v355_v53 = vpop.permute.xlu1 %354 }
  0x92   : > { %v370_v56 = vmul.f32 %v366_v52, %v688_v14  ;;  %v371_v57 = vmul.f32 %v368_v45, %v366_v52 }
  0x93   : > { %v351_v54 = vadd.f32 %v349_v48, %v325_v50  ;;  %v352_v55 = vadd.f32 %v350_v49, %v326_v51 }
  0x94   : > { %v374_v62 = vcombine.low %v370_v56, %v371_v57 }
  0x95   : > { %v357_v58 = vadd.f32 %v355_v53, %v351_v54  ;;  %v358_v59 = vadd.f32 %v355_v53, %v352_v55 }
  0x96   : > { %v397_v15 = vpop.permute.xlu1 %396 }
  0x97   : > { %v361_v61 = vcombine.low %v357_v58, %v358_v59 }
  0x99   : > { %v363_v63 = vmul.f32 %v361_v61, %v246_v60 }
  0x9b   : > { %v376_v0 = vadd.f32 %v374_v62, %v363_v63 }
  0x9d   : > { %v378_v1 = vcombine.high %v376_v0, %v376_v0  ;;  %v381_v2 = vsel %vm380_vm0, %v376_v0, 0.0 }
  0x9e   : > { %v382_v3 = vrot.slane %v381_v2, 4 }
  0x9f   : > { %v388_v4 = vsel %vm380_vm0, %v378_v1, 0.0 }
  0xa0   : > { %v383_v5 = vadd.f32 %v382_v3, %v381_v2  ;;  %v389_v6 = vrot.slane %v388_v4, 4 }
  0xa2   : > { %v384_v7 = vrot.slane %v383_v5, 2  ;;  %v390_v8 = vadd.f32 %v389_v6, %v388_v4 }
  0xa4   : > { %v385_v9 = vadd.f32 %v384_v7, %v383_v5  ;;  %v391_v11 = vrot.slane %v390_v8, 2 }
  0xa6   : > { %v386_v12 = vrot.slane %v385_v9, 1  ;;  %v392_v13 = vadd.f32 %v391_v11, %v390_v8 }
  0xa8   : > { %v387_v16 = vadd.f32 %v386_v12, %v385_v9  ;;  %v393_v17 = vrot.slane %v392_v13, 1 }
  0xaa   : > { %v394_v18 = vadd.f32 %v393_v17, %v392_v13  ;;  %v399_v19 = vadd.f32 %v397_v15, %v387_v16 }
  0xac   : > { %v400_v20 = vadd.f32 %v397_v15, %v394_v18  ;;  %v549_v21 = vmul.f32 -1.442695, %v399_v19 }
  0xae   : > { %596 = vpow2.f32 %v549_v21  ;;  %v550_v22 = vmul.f32 -1.442695, %v400_v20 }
  0xb0   : > { %598 = vpow2.f32 %v550_v22 }
  0xb8   : > { %v597_v23 = vpop.eup %596 }
  0xb9   : > { %v407_v24 = vadd.f32 1.0, %v597_v23 }
  0xba   : > { %v599_v25 = vpop.eup %598 }
  0xbb   : > { %v408_v26 = vadd.f32 1.0, %v599_v25  ;;  %600 = vrcp.f32 %v407_v24 }
  0xbd   : > { %602 = vrcp.f32 %v408_v26 }
  0xc5   : > { %v601_v28 = vpop.eup %600 }
  0xc6   : > { %v417_v30 = vrot.slane %v601_v28, %v686_v10 }
  0xc7   : > { %v603_v31 = vpop.eup %602 }
  0xc8   : > { %v421_v32 = vrot.slane %v603_v31, %v686_v10  ;;  %v425_v33 = vmul.f32 %v417_v30, %v413_v27 }
  0xca   : > { %v426_v34 = vmul.f32 %v423_v29, %v421_v32 }
  0xcc   : > { %v429_v35 = vcombine.low %v425_v33, %v426_v34 }
  0xce   : > { %v431_v36 = vadd.f32 %v429_v35, %v246_v60 }
  0xd0   : > { %432 = vst [vmem:[%s244_s27] sm:$0xff] %v431_v36 }
  0xd1 PF: > { %s13_s14 = sadd.s32 1, %s626_s14   ;;  %s728_s12 = smov %s622_s13 }
  0xd2   : > { %p10_p5 = scmp.ge.s32.totalorder %s13_s14, 4   ;;  %s729_s13 = smov %s731_s15 }
  0xd4   :  { %12 = sbr.rel (!%p10_p5) target bundleno = 2 (0x2), region = 65 }

</bundles_post_ra>
